<compile_context>
chip_gen: v7x
topology: tpu7x:2x2x1
jax: 0.10.0
libtpu: 0.0.40
codegen_flags: <defaults>
</compile_context>

<pallas_src>
import functools

import jax
import jax.numpy as jnp
from jax.experimental import pallas as pl
from jax.experimental.pallas import tpu as pltpu

# ----------------- small synthetic configuration -----------------
VOCAB = 100
B, S = 2, 8
HIDDEN = 32          # backbone hidden_size (stands for 768)
N_HEADS = 2
HEAD_DIM = HIDDEN // N_HEADS
FFN = 64
N_LAYERS = 2
LAYERS = (-1,)       # module default: layers=(-1,)
MLP_HIDDEN = 64      # stands for 512
OUT_DIM = 16         # stands for dim=512
LN_EPS = 1e-12


# ----------------- deterministic parameter init -----------------
def _dense(key, fan_in, fan_out):
    kw, kb = jax.random.split(key)
    w = 0.02 * jax.random.normal(kw, (fan_in, fan_out), jnp.float32)
    b = 0.02 * jax.random.normal(kb, (fan_out,), jnp.float32)
    return w, b


def init_params(key):
    keys = jax.random.split(key, 10 + N_LAYERS)
    p = {}
    p["tok_emb"] = 0.02 * jax.random.normal(keys[0], (VOCAB, HIDDEN), jnp.float32)
    p["pos_emb"] = 0.02 * jax.random.normal(keys[1], (S, HIDDEN), jnp.float32)
    p["typ_emb"] = 0.02 * jax.random.normal(keys[2], (2, HIDDEN), jnp.float32)
    p["emb_ln"] = (jnp.ones((HIDDEN,), jnp.float32), jnp.zeros((HIDDEN,), jnp.float32))
    layers = []
    for i in range(N_LAYERS):
        lk = jax.random.split(keys[3 + i], 6)
        layers.append(dict(
            q=_dense(lk[0], HIDDEN, HIDDEN),
            k=_dense(lk[1], HIDDEN, HIDDEN),
            v=_dense(lk[2], HIDDEN, HIDDEN),
            o=_dense(lk[3], HIDDEN, HIDDEN),
            ln1=(jnp.ones((HIDDEN,), jnp.float32), jnp.zeros((HIDDEN,), jnp.float32)),
            ff1=_dense(lk[4], HIDDEN, FFN),
            ff2=_dense(lk[5], FFN, HIDDEN),
            ln2=(jnp.ones((HIDDEN,), jnp.float32), jnp.zeros((HIDDEN,), jnp.float32)),
        ))
    p["layers"] = layers
    p["pooler"] = _dense(keys[3 + N_LAYERS], HIDDEN, HIDDEN)
    # VisnLangModel MLP head:
    #   Linear(H*L, 512*L) -> ReLU -> Dropout -> Linear(512*L, 512) -> ReLU
    #   -> Dropout -> Linear(512, dim)
    h_in = HIDDEN * len(LAYERS)
    p["mlp1"] = _dense(keys[4 + N_LAYERS], h_in, MLP_HIDDEN * len(LAYERS))
    p["mlp2"] = _dense(keys[5 + N_LAYERS], MLP_HIDDEN * len(LAYERS), MLP_HIDDEN)
    p["mlp3"] = _dense(keys[6 + N_LAYERS], MLP_HIDDEN, OUT_DIM)
    return p


# ----------------- Pallas kernel 1: fused self-attention -----------------
def _attn_kernel(q_ref, k_ref, v_ref, bias_ref, o_ref, *, scale):
    q = q_ref[...]                                     # (B*NH, S, Dh) bf16
    k = k_ref[...]
    v = v_ref[...]
    # scores: (B*NH, S, S), f32 accumulation on the MXU
    s = jnp.einsum("bqd,bkd->bqk", q, k,
                   preferred_element_type=jnp.float32) * scale
    s = s + bias_ref[...]                              # additive mask bias (B*NH, 1, S)
    # softmax (single KV block -> no online-softmax carry needed)
    m = jnp.max(s, axis=-1, keepdims=True)
    p = jnp.exp(s - m)
    denom = jnp.sum(p, axis=-1, keepdims=True)
    p = p * pl.reciprocal(denom, approx=True)          # denom on the EUP slot
    o_ref[...] = jnp.einsum("bqk,bkd->bqd", p.astype(v.dtype), v,
                            preferred_element_type=jnp.float32)


def attention_pallas(q, k, v, bias, *, scale):
    # q,k,v: (B*NH, S, Dh) bf16; bias: (B*NH, 1, S) f32
    BH, Sq, Dh = q.shape
    kern = functools.partial(_attn_kernel, scale=scale)
    return pl.pallas_call(
        kern,
        out_shape=jax.ShapeDtypeStruct((BH, Sq, Dh), jnp.float32),
        in_specs=[pl.BlockSpec(memory_space=pltpu.MemorySpace.VMEM)] * 4,
        out_specs=pl.BlockSpec(memory_space=pltpu.MemorySpace.VMEM),
    )(q, k, v, bias)


# ----------------- Pallas kernel 2: fused MLP head + L2 norm -----------------
def _head_kernel(x_ref, w1_ref, b1_ref, w2_ref, b2_ref, w3_ref, b3_ref, y_ref):
    x = x_ref[...]                                                     # (N, Hin) bf16
    # Linear -> ReLU   (Dropout(0.3) is identity in eval/inference mode)
    h1 = jnp.dot(x, w1_ref[...], preferred_element_type=jnp.float32) + b1_ref[...]
    h1 = jnp.maximum(h1, 0.0)
    # Linear -> ReLU
    h2 = jnp.dot(h1.astype(w2_ref.dtype), w2_ref[...],
                 preferred_element_type=jnp.float32) + b2_ref[...]
    h2 = jnp.maximum(h2, 0.0)
    # Linear
    y = jnp.dot(h2.astype(w3_ref.dtype), w3_ref[...],
                preferred_element_type=jnp.float32) + b3_ref[...]
    # x = x / x.norm(2, dim=-1, keepdim=True)
    # rsqrt goes to the EUP slot (free vs. a VALU divide).  No epsilon, to
    # keep exact parity with the torch reference (same NaN hazard on zero rows).
    y_ref[...] = y * jax.lax.rsqrt(jnp.sum(y * y, axis=-1, keepdims=True))


def visnlang_head_pallas(x, w1, b1, w2, b2, w3, b3):
    Bb, Ss, Hin = x.shape
    N = Bb * Ss
    D = w3.shape[1]
    cast = lambda a: a.astype(jnp.bfloat16)
    x2 = cast(x.reshape(N, Hin))
    # Single block: N = 16 rows total, so no grid -> no per-step pipeline
    # overhead, and the output is just the lane-dense (N, D) MLP result.
    y = pl.pallas_call(
        _head_kernel,
        out_shape=jax.ShapeDtypeStruct((N, D), jnp.float32),
        in_specs=[pl.BlockSpec(memory_space=pltpu.MemorySpace.VMEM)] * 7,
        out_specs=pl.BlockSpec(memory_space=pltpu.MemorySpace.VMEM),
    )(x2, cast(w1), b1[None, :], cast(w2), b2[None, :], cast(w3), b3[None, :])
    return y.reshape(Bb, Ss, D)


# ----------------- tiny BERT-style backbone (JAX glue + Pallas attention) ---
def _layer_norm(x, g, b, eps=LN_EPS):
    mu = x.mean(-1, keepdims=True)
    var = jnp.mean((x - mu) ** 2, axis=-1, keepdims=True)
    return (x - mu) * jax.lax.rsqrt(var + eps) * g + b


def bert_backbone(p, input_ids, attention_mask, token_type_ids):
    pos = jnp.arange(S)
    h = p["tok_emb"][input_ids] + p["pos_emb"][pos][None, :, :] + p["typ_emb"][token_type_ids]
    h = _layer_norm(h, *p["emb_ln"])
    hidden_states = [h]

    # additive mask bias per (batch, head): (B*NH, 1, S)
    mask_bias = (1.0 - attention_mask.astype(jnp.float32)) * -1e9          # (B, S)
    bias_bh = jnp.broadcast_to(
        mask_bias[:, None, None, :], (B, N_HEADS, 1, S)).reshape(B * N_HEADS, 1, S)
    scale = 1.0 / float(HEAD_DIM) ** 0.5

    def proj(x, wb):
        return x @ wb[0] + wb[1]

    def to_heads(t):
        return (t.reshape(B, S, N_HEADS, HEAD_DIM)
                 .transpose(0, 2, 1, 3)
                 .reshape(B * N_HEADS, S, HEAD_DIM)
                 .astype(jnp.bfloat16))

    for lp in p["layers"]:
        # fused QKV projection: one matmul on the concatenated weight
        wqkv = jnp.concatenate([lp["q"][0], lp["k"][0], lp["v"][0]], axis=1)
        bqkv = jnp.concatenate([lp["q"][1], lp["k"][1], lp["v"][1]], axis=0)
        qkv = h @ wqkv + bqkv                                               # (B, S, 3H)
        q, k, v = jnp.split(qkv, 3, axis=-1)

        ctx = attention_pallas(to_heads(q), to_heads(k), to_heads(v),
                               bias_bh, scale=scale)                        # (B*NH, S, Dh)
        ctx = (ctx.reshape(B, N_HEADS, S, HEAD_DIM)
                  .transpose(0, 2, 1, 3)
                  .reshape(B, S, HIDDEN))

        h = _layer_norm(h + proj(ctx, lp["o"]), *lp["ln1"])
        ff = proj(jax.nn.gelu(proj(h, lp["ff1"])), lp["ff2"])
        h = _layer_norm(h + ff, *lp["ln2"])
        hidden_states.append(h)

    pooled = jnp.tanh(h[:, 0, :] @ p["pooler"][0] + p["pooler"][1])
    return h, pooled, tuple(hidden_states)


# ----------------- full VisnLangModel forward -----------------
def visnlang_forward(p, input_ids, attention_mask=None, token_type_ids=None):
    if attention_mask is None:
        attention_mask = jnp.ones_like(input_ids)
    if token_type_ids is None:
        token_type_ids = jnp.zeros_like(input_ids)

    output, pooled_output, hidden_states = bert_backbone(
        p, input_ids, attention_mask, token_type_ids)

    # x = cat(hidden_states[layer] for layer in sorted(layers), dim=-1)
    x = jnp.concatenate([hidden_states[l] for l in sorted(LAYERS)], axis=-1)

    # fused MLP head + L2 norm (Pallas, lane-dense output); the concat with the
    # backbone output is done by XLA on data already resident in HBM.
    y = visnlang_head_pallas(
        x,
        p["mlp1"][0], p["mlp1"][1],
        p["mlp2"][0], p["mlp2"][1],
        p["mlp3"][0], p["mlp3"][1],
    )

    # lang_visn_embedding = cat((output, x), -1)
    lang_visn_embedding = jnp.concatenate([output, y], axis=-1)
    # lang_visn_pooled_output = cat((pooled_output, x[:, 0]), -1)
    lang_visn_pooled_output = jnp.concatenate([pooled_output, y[:, 0]], axis=-1)

    # new_bert_output = (embedding, pooled, hidden_states, ...)
    return (lang_visn_embedding, lang_visn_pooled_output, tuple(hidden_states))


if __name__ == "__main__":
    key = jax.random.PRNGKey(0)
    pkey, ikey = jax.random.split(key)
    params = init_params(pkey)

    input_ids = jax.random.randint(ikey, (B, S), 0, VOCAB, dtype=jnp.int32)
    attention_mask = jnp.ones((B, S), jnp.int32)
    token_type_ids = jnp.zeros((B, S), jnp.int32)

    fwd = jax.jit(visnlang_forward)
    out = fwd(params, input_ids, attention_mask, token_type_ids)
    out = jax.block_until_ready(out)

    assert out[0].shape == (B, S, HIDDEN + OUT_DIM)
    assert out[1].shape == (B, HIDDEN + OUT_DIM)
    assert len(out[2]) == N_LAYERS + 1
    assert bool(jnp.all(jnp.isfinite(out[0])))

    print("KERNEL_OK")
</pallas_src>

<mosaic_0001>
module attributes {stable_mosaic.version = 11 : i64} {
  func.func @_attn_kernel(%arg0: memref<4x8x16xbf16, #tpu.memory_space<vmem>>, %arg1: memref<4x8x16xbf16, #tpu.memory_space<vmem>>, %arg2: memref<4x8x16xbf16, #tpu.memory_space<vmem>>, %arg3: memref<4x1x8xf32, #tpu.memory_space<vmem>>, %arg4: memref<4x8x16xf32, #tpu.memory_space<vmem>>) attributes {dimension_semantics = [], scalar_prefetch = 0 : i64, scratch_operands = 0 : i64, tpu.core_type = #tpu.core_type<tc>} {
    %c0 = arith.constant 0 : index
    %c0_0 = arith.constant 0 : index
    %c0_1 = arith.constant 0 : index
    %0 = vector.load %arg0[%c0, %c0_0, %c0_1] : memref<4x8x16xbf16, #tpu.memory_space<vmem>>, vector<4x8x16xbf16>
    %c0_2 = arith.constant 0 : index
    %c0_3 = arith.constant 0 : index
    %c0_4 = arith.constant 0 : index
    %1 = vector.load %arg1[%c0_2, %c0_3, %c0_4] : memref<4x8x16xbf16, #tpu.memory_space<vmem>>, vector<4x8x16xbf16>
    %c0_5 = arith.constant 0 : index
    %c0_6 = arith.constant 0 : index
    %c0_7 = arith.constant 0 : index
    %2 = vector.load %arg2[%c0_5, %c0_6, %c0_7] : memref<4x8x16xbf16, #tpu.memory_space<vmem>>, vector<4x8x16xbf16>
    "tpu.trace_start"() <{level = 10 : i32, message = "bqd,bkd->bqk"}> : () -> ()
    %cst = arith.constant dense<0.000000e+00> : vector<4x8x8xf32>
    %3 = tpu.matmul %0, %1, %cst {dimension_numbers = #tpu.dot_dimension_numbers<[2], [2], [1], [1], [0, 0, 0, 1, 1, 1], [0], [0]>} : vector<4x8x16xbf16>, vector<4x8x16xbf16>, vector<4x8x8xf32> -> vector<4x8x8xf32>
    "tpu.trace_stop"() : () -> ()
    %cst_8 = arith.constant 2.500000e-01 : f32
    %4 = vector.broadcast %cst_8 : f32 to vector<4x8x8xf32>
    %5 = arith.mulf %3, %4 : vector<4x8x8xf32>
    %c0_9 = arith.constant 0 : index
    %c0_10 = arith.constant 0 : index
    %c0_11 = arith.constant 0 : index
    %6 = vector.load %arg3[%c0_9, %c0_10, %c0_11] : memref<4x1x8xf32, #tpu.memory_space<vmem>>, vector<4x1x8xf32>
    %7 = vector.broadcast %6 : vector<4x1x8xf32> to vector<4x8x8xf32>
    %8 = arith.addf %5, %7 : vector<4x8x8xf32>
    %cst_12 = arith.constant dense<0xFF800000> : vector<4x8xf32>
    %9 = vector.multi_reduction <maximumf>, %8, %cst_12 [2] : vector<4x8x8xf32> to vector<4x8xf32>
    %10 = vector.shape_cast %9 : vector<4x8xf32> to vector<4x8x1xf32>
    %11 = vector.broadcast %10 : vector<4x8x1xf32> to vector<4x8x8xf32>
    %12 = arith.subf %8, %11 : vector<4x8x8xf32>
    %13 = math.exp %12 : vector<4x8x8xf32>
    %cst_13 = arith.constant dense<0.000000e+00> : vector<4x8xf32>
    %14 = vector.multi_reduction <add>, %13, %cst_13 [2] : vector<4x8x8xf32> to vector<4x8xf32>
    %15 = vector.shape_cast %14 : vector<4x8xf32> to vector<4x8x1xf32>
    %16 = tpu.reciprocal %15 {approx = true} : vector<4x8x1xf32> -> vector<4x8x1xf32>
    %17 = vector.broadcast %16 : vector<4x8x1xf32> to vector<4x8x8xf32>
    %18 = arith.mulf %13, %17 : vector<4x8x8xf32>
    %19 = arith.truncf %18 : vector<4x8x8xf32> to vector<4x8x8xbf16>
    "tpu.trace_start"() <{level = 10 : i32, message = "bqk,bkd->bqd"}> : () -> ()
    %cst_14 = arith.constant dense<0.000000e+00> : vector<4x8x16xf32>
    %20 = tpu.matmul %19, %2, %cst_14 {dimension_numbers = #tpu.dot_dimension_numbers<[2], [1], [1], [2], [0, 0, 0, 1, 1, 2], [0], [0]>} : vector<4x8x8xbf16>, vector<4x8x16xbf16>, vector<4x8x16xf32> -> vector<4x8x16xf32>
    "tpu.trace_stop"() : () -> ()
    %c0_15 = arith.constant 0 : index
    %c0_16 = arith.constant 0 : index
    %c0_17 = arith.constant 0 : index
    %21 = vector.load %arg4[%c0_15, %c0_16, %c0_17] : memref<4x8x16xf32, #tpu.memory_space<vmem>>, vector<4x8x16xf32>
    tpu.vector_store %arg4[%c0_15, %c0_16, %c0_17], %20 {strides = array<i32>} : memref<4x8x16xf32, #tpu.memory_space<vmem>>, vector<4x8x16xf32>,
    return
  }
}

module attributes {stable_mosaic.version = 11 : i64} {
  func.func @_head_kernel(%arg0: memref<16x32xbf16, #tpu.memory_space<vmem>>, %arg1: memref<32x64xbf16, #tpu.memory_space<vmem>>, %arg2: memref<1x64xf32, #tpu.memory_space<vmem>>, %arg3: memref<64x64xbf16, #tpu.memory_space<vmem>>, %arg4: memref<1x64xf32, #tpu.memory_space<vmem>>, %arg5: memref<64x16xbf16, #tpu.memory_space<vmem>>, %arg6: memref<1x16xf32, #tpu.memory_space<vmem>>, %arg7: memref<16x16xf32, #tpu.memory_space<vmem>>) attributes {dimension_semantics = [], scalar_prefetch = 0 : i64, scratch_operands = 0 : i64, tpu.core_type = #tpu.core_type<tc>} {
    %c0 = arith.constant 0 : index
    %c0_0 = arith.constant 0 : index
    %0 = vector.load %arg0[%c0, %c0_0] : memref<16x32xbf16, #tpu.memory_space<vmem>>, vector<16x32xbf16>
    %c0_1 = arith.constant 0 : index
    %c0_2 = arith.constant 0 : index
    %1 = vector.load %arg1[%c0_1, %c0_2] : memref<32x64xbf16, #tpu.memory_space<vmem>>, vector<32x64xbf16>
    %cst = arith.constant dense<0.000000e+00> : vector<16x64xf32>
    %2 = tpu.matmul %0, %1, %cst {dimension_numbers = #tpu.dot_dimension_numbers<[1], [0], [0], [1], [0, 0, 1, 1], [], []>} : vector<16x32xbf16>, vector<32x64xbf16>, vector<16x64xf32> -> vector<16x64xf32>
    %c0_3 = arith.constant 0 : index
    %c0_4 = arith.constant 0 : index
    %3 = vector.load %arg2[%c0_3, %c0_4] : memref<1x64xf32, #tpu.memory_space<vmem>>, vector<1x64xf32>
    %4 = vector.broadcast %3 : vector<1x64xf32> to vector<16x64xf32>
    %5 = arith.addf %2, %4 : vector<16x64xf32>
    %cst_5 = arith.constant 0.000000e+00 : f32
    %6 = vector.broadcast %cst_5 : f32 to vector<16x64xf32>
    %7 = arith.maximumf %5, %6 : vector<16x64xf32>
    %8 = arith.truncf %7 : vector<16x64xf32> to vector<16x64xbf16>
    %c0_6 = arith.constant 0 : index
    %c0_7 = arith.constant 0 : index
    %9 = vector.load %arg3[%c0_6, %c0_7] : memref<64x64xbf16, #tpu.memory_space<vmem>>, vector<64x64xbf16>
    %cst_8 = arith.constant dense<0.000000e+00> : vector<16x64xf32>
    %10 = tpu.matmul %8, %9, %cst_8 {dimension_numbers = #tpu.dot_dimension_numbers<[1], [0], [0], [1], [0, 0, 1, 1], [], []>} : vector<16x64xbf16>, vector<64x64xbf16>, vector<16x64xf32> -> vector<16x64xf32>
    %c0_9 = arith.constant 0 : index
    %c0_10 = arith.constant 0 : index
    %11 = vector.load %arg4[%c0_9, %c0_10] : memref<1x64xf32, #tpu.memory_space<vmem>>, vector<1x64xf32>
    %12 = vector.broadcast %11 : vector<1x64xf32> to vector<16x64xf32>
    %13 = arith.addf %10, %12 : vector<16x64xf32>
    %cst_11 = arith.constant 0.000000e+00 : f32
    %14 = vector.broadcast %cst_11 : f32 to vector<16x64xf32>
    %15 = arith.maximumf %13, %14 : vector<16x64xf32>
    %16 = arith.truncf %15 : vector<16x64xf32> to vector<16x64xbf16>
    %c0_12 = arith.constant 0 : index
    %c0_13 = arith.constant 0 : index
    %17 = vector.load %arg5[%c0_12, %c0_13] : memref<64x16xbf16, #tpu.memory_space<vmem>>, vector<64x16xbf16>
    %cst_14 = arith.constant dense<0.000000e+00> : vector<16x16xf32>
    %18 = tpu.matmul %16, %17, %cst_14 {dimension_numbers = #tpu.dot_dimension_numbers<[1], [0], [0], [1], [0, 0, 1, 1], [], []>} : vector<16x64xbf16>, vector<64x16xbf16>, vector<16x16xf32> -> vector<16x16xf32>
    %c0_15 = arith.constant 0 : index
    %c0_16 = arith.constant 0 : index
    %19 = vector.load %arg6[%c0_15, %c0_16] : memref<1x16xf32, #tpu.memory_space<vmem>>, vector<1x16xf32>
    %20 = vector.broadcast %19 : vector<1x16xf32> to vector<16x16xf32>
    %21 = arith.addf %18, %20 : vector<16x16xf32>
    %22 = arith.mulf %21, %21 : vector<16x16xf32>
    %cst_17 = arith.constant dense<0.000000e+00> : vector<16xf32>
    %23 = vector.multi_reduction <add>, %22, %cst_17 [1] : vector<16x16xf32> to vector<16xf32>
    %24 = vector.shape_cast %23 : vector<16xf32> to vector<16x1xf32>
    %25 = math.rsqrt %24 : vector<16x1xf32>
    %26 = vector.broadcast %25 : vector<16x1xf32> to vector<16x16xf32>
    %27 = arith.mulf %21, %26 : vector<16x16xf32>
    %c0_18 = arith.constant 0 : index
    %c0_19 = arith.constant 0 : index
    %28 = vector.load %arg7[%c0_18, %c0_19] : memref<16x16xf32, #tpu.memory_space<vmem>>, vector<16x16xf32>
    tpu.vector_store %arg7[%c0_18, %c0_19], %27 {strides = array<i32>} : memref<16x16xf32, #tpu.memory_space<vmem>>, vector<16x16xf32>,
    return
  }
}

</mosaic_0001>

<bundles_post_ra>
// kernel: visnlang_forward.5
= control target key start
LH: loop header
LB: loop body
LE: loop exit
PB: predicated region body
PF: predicated region fallthrough
CT: control target
= control target key end

     0   :  { %v373_v0 = vmov 0.0   ;;  %vm374_vm0 = vmmov 0   ;;  %vm57_vm1 = vcmask 261120   ;;  %vm144_vm2 = vcmask 523264   ;;  %s472_s1 = inlined_call_operand.vmem [shape: bf16[32,64], index: 1, kind: input, shape index: {}]   ;;  %s473_s3 = inlined_call_operand.vmem [shape: bf16[64,64], index: 3, kind: input, shape index: {}]   ;;  %s474_s0 = inlined_call_operand.vmem [shape: bf16[16,32], index: 0, kind: input, shape index: {}]   ;;  %s475_s5 = inlined_call_operand.vmem [shape: bf16[64,16], index: 5, kind: input, shape index: {}]   ;;  %s476_s2 = inlined_call_operand.vmem [shape: f32[1,64], index: 2, kind: input, shape index: {}]   ;;  %s477_s4 = inlined_call_operand.vmem [shape: f32[1,64], index: 4, kind: input, shape index: {}]   ;;  %s478_s6 = inlined_call_operand.vmem [shape: f32[1,16], index: 6, kind: input, shape index: {}]   ;;  %s479_s7 = inlined_call_operand.vmem [shape: f32[16,16], index: 7, kind: output, shape index: {}]  }
   0x1   :  { %324 = vmatprep.subr.bf16.mxu0 %v373_v0  ;;  %v358_v1 = vld [vmem:[%s472_s1] sm:$0xff]   ;;  %328 = vmatprep.mubr.msk.bf16.mxu0 %vm374_vm0, %v373_v0  ;;  %v359_v2 = vld [vmem:[%s472_s1 + $0x8] sm:$0xff]   ;;  %v363_v6 = vld [vmem:[%s473_s3 + $0x10] sm:$0xff]   ;;  %vm277_vm3 = vcmask 130048  }
   0x2   :  { %332 = vmatprep.subr.bf16.mxu1 %v373_v0  ;;  %340 = vmatprep.mubr.msk.bf16.mxu1 %vm374_vm0, %v373_v0  ;;  %v361_v3 = vld [vmem:[%s473_s3] sm:$0xff]   ;;  %v362_v5 = vld [vmem:[%s473_s3 + $0x8] sm:$0xff]   ;;  %v364_v7 = vld [vmem:[%s473_s3 + $0x18] sm:$0xff]  }
   0x3   :  { %325 = vmatpush3.bf16.msra.mxu0 %v358_v1  ;;  %v360_v4 = vld [vmem:[%s474_s0] sm:$0xff]   ;;  %333 = vmatpush3.bf16.msra.mxu1 %v361_v3  ;;  %v366_v9 = vld [vmem:[%s475_s5 + $0x8] sm:$0xff]   ;;  %v367_v20 = vld [vmem:[%s475_s5 + $0x10] sm:$0xff]  }
   0x4   :  { %326 = vmatprep.subr.bf16.mxu0 %v373_v0  ;;  %334 = vmatprep.subr.bf16.mxu1 %v373_v0  ;;  %v365_v8 = vld [vmem:[%s475_s5] sm:$0xff]   ;;  %v368_v21 = vld [vmem:[%s475_s5 + $0x18] sm:$0xff]  }
   0x5   :  { %v294_v10 = vld [vmem:[%s476_s2] ss:$0 sm:$0xff] }
   0x6   :  { %v299_v22 = vld [vmem:[%s477_s4] ss:$0 sm:$0xff] }
   0x7   :  { %327 = vmatpush3.bf16.msra.mxu0 %v359_v2  ;;  %335 = vmatpush3.bf16.msra.mxu1 %v362_v5  ;;  %v305_v32 = vld [vmem:[%s478_s6] ss:$0 sm:$0xff] }
   0x8   :  { %344 = vmatprep.subr.bf16.mxu0 %v373_v0  ;;  %336 = vmatprep.subr.bf16.mxu1 %v373_v0 }
   0xa   :  { %329 = vmatmul.mubr.msk.bf16.vlgmr.msra.gmra.mrb[0].mxu0 %vm57_vm1, %v360_v4 }
   0xb   :  { %352 = vmatprep.mubr.msk.bf16.mxu0 %vm374_vm0, %v373_v0  ;;  %337 = vmatpush3.bf16.msra.mxu1 %v363_v6 }
   0xc   :  { %338 = vmatprep.subr.bf16.mxu1 %v373_v0  ;;  %345 = vmatpush3.bf16.msra.mxu0 %v365_v8 }
   0xd   :  { %346 = vmatprep.subr.bf16.mxu0 %v373_v0 }
   0xf   :  { %339 = vmatpush3.bf16.msra.mxu1 %v364_v7 }
  0x10   :  { %347 = vmatpush3.bf16.msra.mxu0 %v366_v9 }
  0x11   :  { %348 = vmatprep.subr.bf16.mxu0 %v373_v0 }
  0x14   :  { %349 = vmatpush3.bf16.msra.mxu0 %v367_v20 }
  0x15   :  { %350 = vmatprep.subr.bf16.mxu0 %v373_v0 }
  0x18   :  { %351 = vmatpush3.bf16.msra.mxu0 %v368_v21 }
  0xdd   :  { %v95_v11 = vpop.f32.mrb[0].mxu0 }
  0xde   :  { %v96_v12 = vadd.f32 %v294_v10, %v95_v11  ;;  %v330_v13 = vpop.f32.mrb[1].mxu0 }
  0xdf   :  { %v98_v14 = vpop.f32.mrb[2].mxu0 }
  0xe0   :  { %v99_v15 = vadd.f32 %v294_v10, %v98_v14  ;;  %v331_v16 = vpop.f32.mrb[3].mxu0  ;;  %v102_v17 = vmax.f32 %v96_v12, 0.0 }
  0xe2   :  { %v103_v18 = vmax.f32 %v99_v15, 0.0 }
  0xe4   :  { %v104_v19 = vpack.c.bf16 %v103_v18, %v102_v17 }
  0xe6   :  { %341 = vmatmul.mubr.msk.bf16.vlgmr.msra.gmra.mrb[0].mxu1 %vm144_vm2, %v104_v19 }
 0x1b9   :  { %v182_v23 = vpop.f32.mrb[0].mxu1 }
 0x1ba   :  { %v183_v24 = vadd.f32 %v299_v22, %v182_v23  ;;  %v342_v25 = vpop.f32.mrb[1].mxu1 }
 0x1bb   :  { %v185_v26 = vpop.f32.mrb[2].mxu1 }
 0x1bc   :  { %v186_v27 = vadd.f32 %v299_v22, %v185_v26  ;;  %v343_v28 = vpop.f32.mrb[3].mxu1  ;;  %v189_v29 = vmax.f32 %v183_v24, 0.0 }
 0x1be   :  { %v190_v30 = vmax.f32 %v186_v27, 0.0 }
 0x1c0   :  { %v191_v31 = vpack.c.bf16 %v190_v30, %v189_v29 }
 0x1c2   :  { %353 = vmatmul.mubr.msk.bf16.vlgmr.msra.gmra.mrb[4].mxu0 %vm144_vm2, %v191_v31 }
 0x295   :  { %v268_v33 = vpop.f32.mrb[4].mxu0 }
 0x296   :  { %v269_v34 = vadd.f32 %v305_v32, %v268_v33  ;;  %v354_v35 = vpop.f32.mrb[5].mxu0 }
 0x297   :  { %v271_v36 = vpop.f32.mrb[6].mxu0 }
 0x298   :  { %v272_v37 = vadd.f32 %v305_v32, %v271_v36  ;;  %v355_v38 = vpop.f32.mrb[7].mxu0  ;;  %v275_v39 = vmul.f32 %v269_v34, %v269_v34 }
 0x29a   :  { %v278_v40 = vsel %vm277_vm3, %v275_v39, 0.0  ;;  %v276_v41 = vmul.f32 %v272_v37, %v272_v37 }
 0x29b   :  { %279 = vadd.xlane.f32.xlu0 %v278_v40 }
 0x29c   :  { %v281_v42 = vsel %vm277_vm3, %v276_v41, 0.0 }
 0x29f   :  { %282 = vadd.xlane.f32.xlu0 %v281_v42 }
 0x328   :  { %v280_v43 = vpop.xlane.xlu0 %279 }
 0x329   :  { %369 = vrsqrt.f32 %v280_v43 }
 0x32c   :  { %v283_v44 = vpop.xlane.xlu0 %282 }
 0x32d   :  { %371 = vrsqrt.f32 %v283_v44 }
 0x333   :  { %v370_v45 = vpop.eup %369 }
 0x334   :  { %v286_v46 = vmul.f32 %v370_v45, %v269_v34 }
 0x336   :  { %288 = vst.msk [vmem:[%s479_s7] sm:$0xff] %vm277_vm3, %v286_v46 }
 0x337   :  { %v372_v47 = vpop.eup %371 }
 0x338   :  { %v287_v48 = vmul.f32 %v372_v47, %v272_v37 }
 0x33a   :  { %289 = vst.msk [vmem:[%s479_s7 + $0x8] sm:$0xff] %vm277_vm3, %v287_v48 }

// kernel: visnlang_forward.3
= control target key start
LH: loop header
LB: loop body
LE: loop exit
PB: predicated region body
PF: predicated region fallthrough
CT: control target
= control target key end

     0   :  { %vm30_vm0 = vcmask 130048   ;;  %v587_v0 = vmov 0.0   ;;  %vm588_vm1 = vmmov 0   ;;  %vm251_vm2 = vcmask 64512   ;;  %s722_s1 = inlined_call_operand.vmem [shape: bf16[4,8,16], index: 1, kind: input, shape index: {}]   ;;  %s723_s0 = inlined_call_operand.vmem [shape: bf16[4,8,16], index: 0, kind: input, shape index: {}]   ;;  %s724_s3 = inlined_call_operand.vmem [shape: f32[4,1,8], index: 3, kind: input, shape index: {}]   ;;  %s725_s2 = inlined_call_operand.vmem [shape: bf16[4,8,16], index: 2, kind: input, shape index: {}]   ;;  %s726_s4 = inlined_call_operand.vmem [shape: f32[4,8,16], index: 4, kind: output, shape index: {}]  }
   0x1   :  { %521 = vmatprep.subr.bf16.mxu0 %v587_v0  ;;  %v22_v1 = vld [vmem:[%s722_s1] sm:$0xf]  ;;  %527 = vmatprep.subr.bf16.mxu1 %v587_v0  ;;  %v23_v2 = vld [vmem:[%s722_s1 + $0x4] sm:$0xf]  ;;  %v24_v5 = vld [vmem:[%s722_s1 + $0x8] sm:$0xf] }
   0x2   :  { %v35_v3 = vsel %vm30_vm0, %v22_v1, 0  ;;  %v81_v4 = vsel %vm30_vm0, %v23_v2, 0  ;;  %523 = vmatprep.mubr.msk.bf16.mxu0 %vm588_vm1, %v587_v0  ;;  %529 = vmatprep.mubr.msk.bf16.mxu1 %vm588_vm1, %v587_v0  ;;  %v25_v6 = vld [vmem:[%s722_s1 + $0xc] sm:$0xf]  ;;  %v18_v7 = vld [vmem:[%s723_s0] sm:$0xf] }
   0x3   :  { %522 = vmatpush3.bf16.xpose.msra.mxu0 %v35_v3  ;;  %528 = vmatpush3.bf16.xpose.msra.mxu1 %v81_v4  ;;  %v19_v8 = vld [vmem:[%s723_s0 + $0x4] sm:$0xf]  ;;  %v127_v9 = vsel %vm30_vm0, %v24_v5, 0  ;;  %v173_v10 = vsel %vm30_vm0, %v25_v6, 0  ;;  %v20_v11 = vld [vmem:[%s723_s0 + $0x8] sm:$0xf] }
   0x4   :  { %533 = vmatprep.subr.bf16.mxu0 %v587_v0  ;;  %539 = vmatprep.subr.bf16.mxu1 %v587_v0  ;;  %v21_v12 = vld [vmem:[%s723_s0 + $0xc] sm:$0xf]  ;;  %v497_v15 = vld [vmem:[%s724_s3] ss:$0 sm:$0xff]  ;;  %v498_v16 = vld [vmem:[%s724_s3 + $0x1] ss:$0 sm:$0xff] }
   0x5   :  { %v499_v31 = vld [vmem:[%s724_s3 + $0x2] ss:$0 sm:$0xff]  ;;  %v500_v32 = vld [vmem:[%s724_s3 + $0x3] ss:$0 sm:$0xff]  ;;  %vm303_vm3 = vcmask 1043456  }
   0x6   :  { %v26_v2 = vld [vmem:[%s725_s2] sm:$0xf]  ;;  %v27_v4 = vld [vmem:[%s725_s2 + $0x4] sm:$0xf]  ;;  %v28_v6 = vld [vmem:[%s725_s2 + $0x8] sm:$0xf] }
   0x7   :  { %v305_v3 = vsel %vm303_vm3, %v26_v2, 0  ;;  %v351_v5 = vsel %vm303_vm3, %v27_v4, 0 }
   0xa   :  { %524 = vmatmul.mubr.msk.bf16.vlgmr.msra.gmra.mrb[0].mxu0 %vm30_vm0, %v18_v7  ;;  %530 = vmatmul.mubr.msk.bf16.vlgmr.msra.gmra.mrb[0].mxu1 %vm30_vm0, %v19_v8  ;;  %v397_v7 = vsel %vm303_vm3, %v28_v6, 0  ;;  %v29_v8 = vld [vmem:[%s725_s2 + $0xc] sm:$0xf] }
   0xb   :  { %534 = vmatpush3.bf16.xpose.msra.mxu0 %v127_v9  ;;  %540 = vmatpush3.bf16.xpose.msra.mxu1 %v173_v10  ;;  %v443_v9 = vsel %vm303_vm3, %v29_v8, 0 }
   0xc   :  { %535 = vmatprep.mubr.msk.bf16.mxu0 %vm588_vm1, %v587_v0  ;;  %541 = vmatprep.mubr.msk.bf16.mxu1 %vm588_vm1, %v587_v0 }
   0xd   :  { %545 = vmatprep.subr.bf16.mxu0 %v587_v0  ;;  %551 = vmatprep.subr.bf16.mxu1 %v587_v0 }
  0x12   :  { %536 = vmatmul.mubr.msk.bf16.vlgmr.msra.gmra.mrb[4].mxu0 %vm30_vm0, %v20_v11  ;;  %542 = vmatmul.mubr.msk.bf16.vlgmr.msra.gmra.mrb[4].mxu1 %vm30_vm0, %v21_v12 }
  0x13   :  { %547 = vmatprep.mubr.msk.bf16.mxu0 %vm588_vm1, %v587_v0  ;;  %553 = vmatprep.mubr.msk.bf16.mxu1 %vm588_vm1, %v587_v0 }
  0x14   :  { %546 = vmatpush3.bf16.msra.mxu0 %v305_v3  ;;  %552 = vmatpush3.bf16.msra.mxu1 %v351_v5 }
  0x15   :  { %557 = vmatprep.subr.bf16.mxu0 %v587_v0  ;;  %563 = vmatprep.subr.bf16.mxu1 %v587_v0 }
  0xdd   :  { %v71_v13 = vpop.f32.mrb[0].mxu0  ;;  %v117_v14 = vpop.f32.mrb[0].mxu1 }
  0xde   :  { %v215_v17 = vmul.f32 0.25, %v71_v13  ;;  %v525_v18 = vpop.f32.mrb[1].mxu0  ;;  %v216_v19 = vmul.f32 0.25, %v117_v14  ;;  %v531_v20 = vpop.f32.mrb[1].mxu1 }
  0xdf   :  { %v74_v21 = vpop.f32.mrb[2].mxu0  ;;  %v120_v22 = vpop.f32.mrb[2].mxu1 }
  0xe0   :  { %v526_v23 = vpop.f32.mrb[3].mxu0  ;;  %v532_v24 = vpop.f32.mrb[3].mxu1  ;;  %v247_v25 = vadd.f32 %v497_v15, %v215_v17  ;;  %v248_v26 = vadd.f32 %v498_v16, %v216_v19 }
  0xe2   :  { %v252_v27 = vsel %vm251_vm2, %v247_v25, -inf  ;;  %v255_v28 = vsel %vm251_vm2, %v248_v26, -inf }
  0xe3   :  { %253 = vmax.xlane.f32.xlu0 %v252_v27 }
  0xe5   :  { %v163_v29 = vpop.f32.mrb[4].mxu0  ;;  %v209_v30 = vpop.f32.mrb[4].mxu1 }
  0xe6   :  { %v217_v33 = vmul.f32 0.25, %v163_v29  ;;  %v537_v34 = vpop.f32.mrb[5].mxu0  ;;  %v218_v35 = vmul.f32 0.25, %v209_v30  ;;  %v543_v36 = vpop.f32.mrb[5].mxu1 }
  0xe7   :  { %256 = vmax.xlane.f32.xlu0 %v255_v28  ;;  %v166_v37 = vpop.f32.mrb[6].mxu0  ;;  %v212_v38 = vpop.f32.mrb[6].mxu1 }
  0xe8   :  { %v538_v39 = vpop.f32.mrb[7].mxu0  ;;  %v544_v40 = vpop.f32.mrb[7].mxu1  ;;  %v249_v41 = vadd.f32 %v499_v31, %v217_v33  ;;  %v250_v42 = vadd.f32 %v500_v32, %v218_v35 }
  0xea   :  { %v258_v43 = vsel %vm251_vm2, %v249_v41, -inf  ;;  %v261_v44 = vsel %vm251_vm2, %v250_v42, -inf }
  0xeb   :  { %259 = vmax.xlane.f32.xlu1 %v258_v43 }
  0xef   :  { %262 = vmax.xlane.f32.xlu1 %v261_v44 }
 0x170   :  { %v254_v45 = vpop.xlane.xlu0 %253 }
 0x171   :  { %v264_v46 = vsub.f32 %v247_v25, %v254_v45 }
 0x173   :  { %v268_v47 = vmul.f32 1.442695, %v264_v46 }
 0x174   :  { %v257_v48 = vpop.xlane.xlu0 %256 }
 0x175   :  { %571 = vpow2.f32 %v268_v47  ;;  %v265_v49 = vsub.f32 %v248_v26, %v257_v48 }
 0x177   :  { %v270_v50 = vmul.f32 1.442695, %v265_v49 }
 0x178   :  { %v260_v51 = vpop.xlane.xlu1 %259 }
 0x179   :  { %573 = vpow2.f32 %v270_v50  ;;  %v266_v52 = vsub.f32 %v249_v41, %v260_v51 }
 0x17b   :  { %v272_v53 = vmul.f32 1.442695, %v266_v52 }
 0x17c   :  { %v263_v54 = vpop.xlane.xlu1 %262 }
 0x17d   :  { %575 = vpow2.f32 %v272_v53  ;;  %v267_v55 = vsub.f32 %v250_v42, %v263_v54 }
 0x17f   :  { %v572_v56 = vpop.eup %571  ;;  %v274_v57 = vmul.f32 1.442695, %v267_v55 }
 0x180   :  { %v276_v58 = vsel %vm251_vm2, %v572_v56, 0.0 }
 0x181   :  { %577 = vpow2.f32 %v274_v57  ;;  %277 = vadd.xlane.f32.xlu0 %v276_v58 }
 0x183   :  { %v574_v59 = vpop.eup %573 }
 0x184   :  { %v279_v60 = vsel %vm251_vm2, %v574_v59, 0.0 }
 0x185   :  { %280 = vadd.xlane.f32.xlu1 %v279_v60 }
 0x187   :  { %v576_v61 = vpop.eup %575 }
 0x188   :  { %v282_v62 = vsel %vm251_vm2, %v576_v61, 0.0 }
 0x189   :  { %283 = vadd.xlane.f32.xlu0 %v282_v62 }
 0x18b   :  { %v578_v63 = vpop.eup %577 }
 0x18c   :  { %v285_v1 = vsel %vm251_vm2, %v578_v63, 0.0 }
 0x18d   :  { %286 = vadd.xlane.f32.xlu1 %v285_v1 }
 0x20e   :  { %v278_v10 = vpop.xlane.xlu0 %277 }
 0x20f   :  { %579 = vrcp.f32 %v278_v10 }
 0x212   :  { %v281_v11 = vpop.xlane.xlu1 %280 }
 0x213   :  { %581 = vrcp.f32 %v281_v11 }
 0x216   :  { %v284_v12 = vpop.xlane.xlu0 %283 }
 0x217   :  { %583 = vrcp.f32 %v284_v12 }
 0x219   :  { %v580_v13 = vpop.eup %579 }
 0x21a   :  { %v292_v14 = vmul.f32 %v580_v13, %v572_v56  ;;  %v287_v15 = vpop.xlane.xlu1 %286 }
 0x21b   :  { %585 = vrcp.f32 %v287_v15 }
 0x21c   :  { %v296_v16 = vpack.c.bf16 %v292_v14, %v292_v14 }
 0x21d   :  { %v582_v17 = vpop.eup %581 }
 0x21e   :  { %v293_v18 = vmul.f32 %v582_v17, %v574_v59  ;;  %548 = vmatmul.mubr.msk.bf16.vlgmr.msra.gmra.mrb[8].mxu0 %vm251_vm2, %v296_v16 }
 0x21f   :  { %558 = vmatpush3.bf16.msra.mxu0 %v397_v7  ;;  %559 = vmatprep.mubr.msk.bf16.mxu0 %vm588_vm1, %v587_v0 }
 0x220   :  { %v297_v19 = vpack.c.bf16 %v293_v18, %v293_v18 }
 0x221   :  { %v584_v20 = vpop.eup %583 }
 0x222   :  { %v294_v21 = vmul.f32 %v584_v20, %v576_v61  ;;  %554 = vmatmul.mubr.msk.bf16.vlgmr.msra.gmra.mrb[8].mxu1 %vm251_vm2, %v297_v19 }
 0x223   :  { %564 = vmatpush3.bf16.msra.mxu1 %v443_v9  ;;  %565 = vmatprep.mubr.msk.bf16.mxu1 %vm588_vm1, %v587_v0 }
 0x224   :  { %v298_v22 = vpack.c.bf16 %v294_v21, %v294_v21 }
 0x225   :  { %v586_v23 = vpop.eup %585 }
 0x226   :  { %v295_v24 = vmul.f32 %v586_v23, %v578_v63  ;;  %560 = vmatmul.mubr.msk.bf16.vlgmr.msra.gmra.mrb[12].mxu0 %vm251_vm2, %v298_v22 }
 0x228   :  { %v299_v25 = vpack.c.bf16 %v295_v24, %v295_v24 }
 0x22a   :  { %566 = vmatmul.mubr.msk.bf16.vlgmr.msra.gmra.mrb[12].mxu1 %vm251_vm2, %v299_v25 }
 0x2f1   :  { %v341_v26 = vpop.f32.mrb[8].mxu0 }
 0x2f2   :  { %485 = vst.msk [vmem:[%s726_s4] sm:$0xff] %vm30_vm0, %v341_v26  ;;  %v549_v27 = vpop.f32.mrb[9].mxu0 }
 0x2f3   :  { %v344_v28 = vpop.f32.mrb[10].mxu0 }
 0x2f4   :  { %v550_v29 = vpop.f32.mrb[11].mxu0 }
 0x2f5   :  { %v387_v30 = vpop.f32.mrb[8].mxu1 }
 0x2f6   :  { %486 = vst.msk [vmem:[%s726_s4 + $0x8] sm:$0xff] %vm30_vm0, %v387_v30  ;;  %v555_v0 = vpop.f32.mrb[9].mxu1 }
 0x2f7   :  { %v390_v31 = vpop.f32.mrb[10].mxu1 }
 0x2f8   :  { %v556_v32 = vpop.f32.mrb[11].mxu1 }
 0x2f9   :  { %v433_v33 = vpop.f32.mrb[12].mxu0 }
 0x2fa   :  { %487 = vst.msk [vmem:[%s726_s4 + $0x10] sm:$0xff] %vm30_vm0, %v433_v33  ;;  %v561_v34 = vpop.f32.mrb[13].mxu0 }
 0x2fb   :  { %v436_v35 = vpop.f32.mrb[14].mxu0 }
 0x2fc   :  { %v562_v36 = vpop.f32.mrb[15].mxu0 }
 0x2fd   :  { %v479_v37 = vpop.f32.mrb[12].mxu1 }
 0x2fe   :  { %488 = vst.msk [vmem:[%s726_s4 + $0x18] sm:$0xff] %vm30_vm0, %v479_v37  ;;  %v567_v38 = vpop.f32.mrb[13].mxu1 }
 0x2ff   :  { %v482_v39 = vpop.f32.mrb[14].mxu1 }
 0x300   :  { %v568_v40 = vpop.f32.mrb[15].mxu1 }

</bundles_post_ra>
